<compile_context>
chip_gen: v7x
topology: tpu7x:2x2x1
jax: 0.10.0
libtpu: 0.0.40
codegen_flags: <defaults>
</compile_context>

<pallas_src>
import functools

import jax
import jax.numpy as jnp
from jax.experimental import pallas as pl
from jax.experimental.pallas import tpu as pltpu

_MIB = 1024 * 1024


# ---------------------------------------------------------------------------
# small helpers
# ---------------------------------------------------------------------------
def _round_up(x, m):
    return ((x + m - 1) // m) * m


def _elu(x):
    # F.elu with alpha=1.0 (overflow-safe)
    return jnp.where(x > 0, x, jnp.exp(jnp.minimum(x, 0.0)) - 1.0)


def _relu(x):
    return jnp.maximum(x, 0.0)


def _pick_tile(n_pad, candidates):
    for c in candidates:
        if c <= n_pad and n_pad % c == 0:
            return c
    return n_pad


def _propagate_row_tile(n_pad):
    # Largest row tile that still leaves >= 2 row tiles (keeps both v7x
    # TensorCores busy); fall back to a single tile for tiny graphs.
    for c in (2048, 1024, 512, 256, 128):
        if n_pad % c == 0 and n_pad // c >= 2:
            return c
    return n_pad


def _propagate_plan(n_pad, tm, tk, two_fo, out_row_bytes):
    """Decide whether h can live fully in VMEM and pick a vmem limit (v7x-safe)."""
    h_bytes = n_pad * two_fo * 2

    def estimate(resident):
        adj = 2 * tm * tk * 2                       # adj double buffer (bf16)
        h = 2 * h_bytes if resident else 2 * tk * two_fo * 2
        acc = tm * two_fo * 4                       # f32 accumulator scratch
        out = 2 * tm * out_row_bytes                # output double buffer
        misc = 4 * tm * 4 + 2 * tm * (two_fo // 2) * 4   # deg + sample buffers
        return adj + h + acc + out + misc

    h_resident = (h_bytes <= 8 * _MIB) and (estimate(True) <= 40 * _MIB)
    est = estimate(h_resident)
    vmem_limit = int(min(max(est + 4 * _MIB, 32 * _MIB), 48 * _MIB))
    return h_resident, vmem_limit


def _pad2(a, rows, cols, dtype=jnp.float32):
    out = jnp.zeros((rows, cols), dtype)
    return out.at[: a.shape[0], : a.shape[1]].set(a.astype(dtype))


def _hcat_weight(wm, wv, fi_p, fo_p):
    # [Wm | Wv] padded, bf16 (initial layer: mean and var share the input x).
    w = jnp.zeros((fi_p, 2 * fo_p), jnp.float32)
    w = w.at[: wm.shape[0], : wm.shape[1]].set(wm)
    w = w.at[: wv.shape[0], fo_p: fo_p + wv.shape[1]].set(wv)
    return w.astype(jnp.bfloat16)


def _blockdiag_weight(wm, wv, fi_p, fo_p):
    # [[Wm, 0], [0, Wv]] padded, bf16: [mean|var] @ W = [mean@Wm | var@Wv].
    w = jnp.zeros((2 * fi_p, 2 * fo_p), jnp.float32)
    w = w.at[: wm.shape[0], : wm.shape[1]].set(wm)
    w = w.at[fi_p: fi_p + wv.shape[0], fo_p: fo_p + wv.shape[1]].set(wv)
    return w.astype(jnp.bfloat16)


def _cat_bias(bm, bv, fo_p):
    b = jnp.zeros((1, 2 * fo_p), jnp.float32)
    b = b.at[:, : bm.shape[1]].set(bm)
    b = b.at[:, fo_p: fo_p + bv.shape[1]].set(bv)
    return b


# ---------------------------------------------------------------------------
# Pallas kernels
# ---------------------------------------------------------------------------
def _transform_init_kernel(x_ref, w_ref, b_ref, mv_ref, *, fo_pad):
    # One fused matmul against [Wm | Wv]; elu on the mean half, relu on var.
    y = jnp.dot(x_ref[...], w_ref[...], preferred_element_type=jnp.float32)
    y = y + b_ref[...]
    col = jax.lax.broadcasted_iota(jnp.int32, y.shape, 1)
    out = jnp.where(col < fo_pad, _elu(y), _relu(y))
    mv_ref[...] = out.astype(mv_ref.dtype)


def _transform_gcn_kernel(mv_ref, w_ref, b_ref, deg_ref, h_ref, *, fo_pad):
    # One fused matmul against block-diag [[Wm,0],[0,Wv]] on the [mean|var] slab.
    y = jnp.dot(mv_ref[...], w_ref[...], preferred_element_type=jnp.float32)
    y = y + b_ref[...]
    m = _elu(y[:, :fo_pad])
    v = _relu(y[:, fo_pad:]) + 1e-06
    att = jnp.exp(-v)
    m = m * att
    # Pre-scale the variance message by deg^-1/2 of the *source* node so that a
    # single adj0 (= D^-1/2 A D^-1/2) matmul also realizes adj1 = D^-1 A D^-1.
    v = v * (att * att) * deg_ref[...]
    h_ref[...] = jnp.concatenate([m, v], axis=-1).astype(h_ref.dtype)


def _propagate_accumulate(adj_ref, h_ref, acc_ref, *, tk, h_resident):
    k = pl.program_id(1)

    @pl.when(k == 0)
    def _():
        acc_ref[...] = jnp.zeros_like(acc_ref)

    if h_resident:
        off = pl.multiple_of(k * tk, 128)
        h = h_ref[pl.ds(off, tk), :]
    else:
        h = h_ref[...]
    acc_ref[...] += jnp.dot(adj_ref[...], h, preferred_element_type=jnp.float32)


def _propagate_kernel(adj_ref, h_ref, deg_ref, mv_ref, acc_ref,
                      *, fo_pad, tk, h_resident):
    _propagate_accumulate(adj_ref, h_ref, acc_ref, tk=tk, h_resident=h_resident)

    @pl.when(pl.program_id(1) == pl.num_programs(1) - 1)
    def _():
        acc = acc_ref[...]
        m = acc[:, :fo_pad]
        # Post-scale by deg^-1/2 of the destination node (completes adj1).
        v = acc[:, fo_pad:] * deg_ref[...]
        mv_ref[...] = jnp.concatenate([m, v], axis=-1).astype(mv_ref.dtype)


def _propagate_readout_kernel(adj_ref, h_ref, deg_ref, sample_ref, out_ref, acc_ref,
                              *, fo_pad, tk, h_resident, valid_cols):
    _propagate_accumulate(adj_ref, h_ref, acc_ref, tk=tk, h_resident=h_resident)

    @pl.when(pl.program_id(1) == pl.num_programs(1) - 1)
    def _():
        acc = acc_ref[...]
        mean = acc[:, :fo_pad]
        var = jnp.maximum(acc[:, fo_pad:] * deg_ref[...], 0.0)
        z = mean + sample_ref[...] * jnp.sqrt(var)
        col = jax.lax.broadcasted_iota(jnp.int32, z.shape, 1)
        mask = col < valid_cols
        zm = jnp.where(mask, z, -1e30)
        zmax = jnp.max(zm, axis=-1, keepdims=True)
        zs = zm - zmax
        lse = jnp.log(jnp.sum(jnp.exp(zs), axis=-1, keepdims=True))
        out_ref[...] = jnp.where(mask, zs - lse, 0.0)


# ---------------------------------------------------------------------------
# wrappers around pallas_call
# ---------------------------------------------------------------------------
def transform_init(x, w, b, *, tm, fo_pad):
    n, fin_p = x.shape
    two_fo = w.shape[1]
    return pl.pallas_call(
        functools.partial(_transform_init_kernel, fo_pad=fo_pad),
        out_shape=jax.ShapeDtypeStruct((n, two_fo), jnp.bfloat16),
        grid=(n // tm,),
        in_specs=[pl.BlockSpec((tm, fin_p), lambda i: (i, 0)),
                  pl.BlockSpec(w.shape, lambda i: (0, 0)),
                  pl.BlockSpec(b.shape, lambda i: (0, 0))],
        out_specs=pl.BlockSpec((tm, two_fo), lambda i: (i, 0)),
        compiler_params=pltpu.CompilerParams(dimension_semantics=("parallel",)),
    )(x, w, b)


def transform_gcn(mv, w, b, deg, *, tm, fo_pad):
    n, two_fi = mv.shape
    two_fo = w.shape[1]
    return pl.pallas_call(
        functools.partial(_transform_gcn_kernel, fo_pad=fo_pad),
        out_shape=jax.ShapeDtypeStruct((n, two_fo), jnp.bfloat16),
        grid=(n // tm,),
        in_specs=[pl.BlockSpec((tm, two_fi), lambda i: (i, 0)),
                  pl.BlockSpec(w.shape, lambda i: (0, 0)),
                  pl.BlockSpec(b.shape, lambda i: (0, 0)),
                  pl.BlockSpec((tm, 1), lambda i: (i, 0))],
        out_specs=pl.BlockSpec((tm, two_fo), lambda i: (i, 0)),
        compiler_params=pltpu.CompilerParams(dimension_semantics=("parallel",)),
    )(mv, w, b, deg)


def propagate(adj0, h, deg, *, tm, tk, n_pad, fo_pad):
    two_fo = 2 * fo_pad
    h_resident, vmem_limit = _propagate_plan(n_pad, tm, tk, two_fo,
                                             out_row_bytes=two_fo * 2)
    if h_resident:
        h_spec = pl.BlockSpec((n_pad, two_fo), lambda i, k: (0, 0))
    else:
        h_spec = pl.BlockSpec((tk, two_fo), lambda i, k: (k, 0))
    return pl.pallas_call(
        functools.partial(_propagate_kernel, fo_pad=fo_pad, tk=tk,
                          h_resident=h_resident),
        out_shape=jax.ShapeDtypeStruct((n_pad, two_fo), jnp.bfloat16),
        grid=(n_pad // tm, n_pad // tk),
        in_specs=[pl.BlockSpec((tm, tk), lambda i, k: (i, k)),
                  h_spec,
                  pl.BlockSpec((tm, 1), lambda i, k: (i, 0))],
        out_specs=pl.BlockSpec((tm, two_fo), lambda i, k: (i, 0)),
        scratch_shapes=[pltpu.VMEM((tm, two_fo), jnp.float32)],
        compiler_params=pltpu.CompilerParams(
            dimension_semantics=("parallel", "arbitrary"),
            vmem_limit_bytes=vmem_limit),
    )(adj0, h, deg)


def propagate_readout(adj0, h, deg, sample, *, tm, tk, n_pad, fo_pad, valid_cols):
    two_fo = 2 * fo_pad
    h_resident, vmem_limit = _propagate_plan(n_pad, tm, tk, two_fo,
                                             out_row_bytes=fo_pad * 4)
    if h_resident:
        h_spec = pl.BlockSpec((n_pad, two_fo), lambda i, k: (0, 0))
    else:
        h_spec = pl.BlockSpec((tk, two_fo), lambda i, k: (k, 0))
    return pl.pallas_call(
        functools.partial(_propagate_readout_kernel, fo_pad=fo_pad, tk=tk,
                          h_resident=h_resident, valid_cols=valid_cols),
        out_shape=jax.ShapeDtypeStruct((n_pad, fo_pad), jnp.float32),
        grid=(n_pad // tm, n_pad // tk),
        in_specs=[pl.BlockSpec((tm, tk), lambda i, k: (i, k)),
                  h_spec,
                  pl.BlockSpec((tm, 1), lambda i, k: (i, 0)),
                  pl.BlockSpec((tm, fo_pad), lambda i, k: (i, 0))],
        out_specs=pl.BlockSpec((tm, fo_pad), lambda i, k: (i, 0)),
        scratch_shapes=[pltpu.VMEM((tm, two_fo), jnp.float32)],
        compiler_params=pltpu.CompilerParams(
            dimension_semantics=("parallel", "arbitrary"),
            vmem_limit_bytes=vmem_limit),
    )(adj0, h, deg, sample)


# ---------------------------------------------------------------------------
# plain-JAX glue: adjacency normalization, padding, parameter init, forward
# ---------------------------------------------------------------------------
def make_linear_params(key, fan_in, fan_out):
    # deterministic init mimicking nn.Linear default (uniform +- 1/sqrt(fan_in))
    kw, kb = jax.random.split(key)
    bound = 1.0 / jnp.sqrt(float(fan_in))
    w = jax.random.uniform(kw, (fan_in, fan_out), jnp.float32, -bound, bound)
    b = jax.random.uniform(kb, (1, fan_out), jnp.float32, -bound, bound)
    return w, b


def robust_gcn_forward(x, edge_index, params, sample):
    if len(params) < 2:
        raise ValueError("RobustGCN needs at least 2 layers (initial + output).")
    n, fin = x.shape
    fout = params[-1][0].shape[1]

    n_pad = _round_up(n, 128)
    tr = _pick_tile(n_pad, (512, 256, 128))      # transform row tile
    tm = _propagate_row_tile(n_pad)              # propagate row tile
    tk = _pick_tile(n_pad, (512, 256, 128))      # propagate contraction tile

    # ---- adjacency normalization (dense build; f32 math, stored as bf16) ----
    row, col = edge_index[0], edge_index[1]
    adj = jnp.zeros((n, n), jnp.float32).at[row, col].set(1.0)
    idx = jnp.arange(n)
    adj = adj.at[idx, idx].set(1.0)                              # add self loops
    deg = adj.sum(axis=1)
    deg_inv_sqrt = jnp.where(deg > 0.0, jax.lax.rsqrt(deg), 0.0)
    adj0 = adj * deg_inv_sqrt[:, None] * deg_inv_sqrt[None, :]
    # adj1 = D^-1 A D^-1 = diag(d^-1/2) adj0 diag(d^-1/2) is realized inside the
    # kernels via deg^-1/2 row scalings, so only one adjacency is stored.

    adj0_p = _pad2(adj0, n_pad, n_pad, jnp.bfloat16)
    deg_p = jnp.zeros((n_pad, 1), jnp.float32).at[:n, 0].set(deg_inv_sqrt)

    # ---- pad features to lane-dense (multiple-of-128) widths, bf16 inputs ----
    fin_p = _round_up(fin, 128)
    x_p = _pad2(x, n_pad, fin_p, jnp.bfloat16)

    # ---- layer 0: initial transform (no attention, no propagation) ----
    wm, bm, wv, bv = params[0]
    fo_p = _round_up(wm.shape[1], 128)
    w0 = _hcat_weight(wm, wv, fin_p, fo_p)
    b0 = _cat_bias(bm, bv, fo_p)
    mv = transform_init(x_p, w0, b0, tm=tr, fo_pad=fo_p)          # [mean|var] bf16

    prev_fo_p = fo_p
    out_p = None
    n_layers = len(params)
    for li in range(1, n_layers):
        wm, bm, wv, bv = params[li]
        fi_p = prev_fo_p
        fo_p = _round_up(wm.shape[1], 128)
        wblk = _blockdiag_weight(wm, wv, fi_p, fo_p)
        bcat = _cat_bias(bm, bv, fo_p)
        h = transform_gcn(mv, wblk, bcat, deg_p, tm=tr, fo_pad=fo_p)
        if li == n_layers - 1:
            sample_p = _pad2(sample, n_pad, fo_p, jnp.float32)
            out_p = propagate_readout(adj0_p, h, deg_p, sample_p,
                                      tm=tm, tk=tk, n_pad=n_pad,
                                      fo_pad=fo_p, valid_cols=fout)
        else:
            mv = propagate(adj0_p, h, deg_p, tm=tm, tk=tk, n_pad=n_pad, fo_pad=fo_p)
        prev_fo_p = fo_p

    return out_p[:n, :fout]


# ---------------------------------------------------------------------------
# main
# ---------------------------------------------------------------------------
if __name__ == "__main__":
    N = 32              # nodes
    E = 96              # edges
    IN_C = 16
    HID_C = 32
    OUT_C = 8
    NUM_LAYERS = 3

    key = jax.random.PRNGKey(0)
    k_x, k_row, k_col, k_samp, k_params = jax.random.split(key, 5)

    x = jax.random.normal(k_x, (N, IN_C), jnp.float32)
    row = jax.random.randint(k_row, (E,), 0, N)
    col = jax.random.randint(k_col, (E,), 0, N)
    edge_index = jnp.stack([row, col], axis=0)

    # parameters: (in->hid), hid->hid x (num_layers-2), hid->out
    dims = [(IN_C, HID_C)] + [(HID_C, HID_C)] * (NUM_LAYERS - 2) + [(HID_C, OUT_C)]
    layer_keys = jax.random.split(k_params, len(dims))
    params = []
    for lk, (fi, fo) in zip(layer_keys, dims):
        km, kv = jax.random.split(lk)
        wm, bm = make_linear_params(km, fi, fo)
        wv, bv = make_linear_params(kv, fi, fo)
        params.append((wm, bm, wv, bv))

    sample = jax.random.normal(k_samp, (N, OUT_C), jnp.float32)

    out = robust_gcn_forward(x, edge_index, params, sample)
    out = jax.block_until_ready(out)

    assert out.shape == (N, OUT_C)
    assert bool(jnp.all(jnp.isfinite(out)))
    # log_softmax rows should sum (in prob space) to ~1
    assert bool(jnp.allclose(jnp.sum(jnp.exp(out), axis=-1), 1.0, atol=1e-3))

    print("KERNEL_OK")
</pallas_src>

<mosaic_0001>
module attributes {stable_mosaic.version = 11 : i64} {
  func.func @_transform_init_kernel(%arg0: i32, %arg1: memref<128x128xbf16, #tpu.memory_space<vmem>>, %arg2: memref<128x256xbf16, #tpu.memory_space<vmem>>, %arg3: memref<1x256xf32, #tpu.memory_space<vmem>>, %arg4: memref<128x256xbf16, #tpu.memory_space<vmem>>) attributes {dimension_semantics = [#tpu.dimension_semantics<parallel>], iteration_bounds = array<i64: 1>, scalar_prefetch = 0 : i64, scratch_operands = 0 : i64, tpu.core_type = #tpu.core_type<tc>, window_params = [{transform_indices = @transform_0, window_bounds = array<i64: 128, 128>}, {pipeline_mode = #tpu.pipeline_mode<synchronous>, transform_indices = @transform_1, window_bounds = array<i64: 128, 256>}, {pipeline_mode = #tpu.pipeline_mode<synchronous>, transform_indices = @transform_2, window_bounds = array<i64: 1, 256>}, {transform_indices = @transform_3, window_bounds = array<i64: 128, 256>}]} {
    %c0 = arith.constant 0 : index
    %c0_0 = arith.constant 0 : index
    %0 = vector.load %arg1[%c0, %c0_0] : memref<128x128xbf16, #tpu.memory_space<vmem>>, vector<128x128xbf16>
    %c0_1 = arith.constant 0 : index
    %c0_2 = arith.constant 0 : index
    %1 = vector.load %arg2[%c0_1, %c0_2] : memref<128x256xbf16, #tpu.memory_space<vmem>>, vector<128x256xbf16>
    %cst = arith.constant dense<0.000000e+00> : vector<128x256xf32>
    %2 = tpu.matmul %0, %1, %cst {dimension_numbers = #tpu.dot_dimension_numbers<[1], [0], [0], [1], [0, 0, 1, 1], [], []>} : vector<128x128xbf16>, vector<128x256xbf16>, vector<128x256xf32> -> vector<128x256xf32>
    %c0_3 = arith.constant 0 : index
    %c0_4 = arith.constant 0 : index
    %3 = vector.load %arg3[%c0_3, %c0_4] : memref<1x256xf32, #tpu.memory_space<vmem>>, vector<1x256xf32>
    %4 = vector.broadcast %3 : vector<1x256xf32> to vector<128x256xf32>
    %5 = arith.addf %2, %4 : vector<128x256xf32>
    %6 = tpu.iota {dimensions = array<i32: 1>} : vector<128x256xi32>
    %c128_i32 = arith.constant 128 : i32
    %7 = vector.broadcast %c128_i32 : i32 to vector<128x256xi32>
    %8 = arith.cmpi slt, %6, %7 : vector<128x256xi32>
    %cst_5 = arith.constant 0.000000e+00 : f32
    %9 = vector.broadcast %cst_5 : f32 to vector<128x256xf32>
    %10 = arith.cmpf ogt, %5, %9 : vector<128x256xf32>
    %cst_6 = arith.constant 0.000000e+00 : f32
    %11 = vector.broadcast %cst_6 : f32 to vector<128x256xf32>
    %12 = arith.minimumf %5, %11 : vector<128x256xf32>
    %13 = math.exp %12 : vector<128x256xf32>
    %cst_7 = arith.constant 1.000000e+00 : f32
    %14 = vector.broadcast %cst_7 : f32 to vector<128x256xf32>
    %15 = arith.subf %13, %14 : vector<128x256xf32>
    %16 = arith.select %10, %5, %15 : vector<128x256xi1>, vector<128x256xf32>
    %cst_8 = arith.constant 0.000000e+00 : f32
    %17 = vector.broadcast %cst_8 : f32 to vector<128x256xf32>
    %18 = arith.maximumf %5, %17 : vector<128x256xf32>
    %19 = arith.select %8, %16, %18 : vector<128x256xi1>, vector<128x256xf32>
    %20 = arith.truncf %19 : vector<128x256xf32> to vector<128x256xbf16>
    %c0_9 = arith.constant 0 : index
    %c0_10 = arith.constant 0 : index
    %21 = vector.load %arg4[%c0_9, %c0_10] : memref<128x256xbf16, #tpu.memory_space<vmem>>, vector<128x256xbf16>
    tpu.vector_store %arg4[%c0_9, %c0_10], %20 {strides = array<i32>} : memref<128x256xbf16, #tpu.memory_space<vmem>>, vector<128x256xbf16>,
    return
  }
  func.func @transform_0(%arg0: i32) -> (i32, i32) {
    %c0_i32 = arith.constant 0 : i32
    %c0_i32_0 = arith.constant 0 : i32
    return %arg0, %c0_i32 : i32, i32
  }
  func.func @transform_1(%arg0: i32) -> (i32, i32) {
    %c0_i32 = arith.constant 0 : i32
    %c0_i32_0 = arith.constant 0 : i32
    %c0_i32_1 = arith.constant 0 : i32
    return %c0_i32, %c0_i32_0 : i32, i32
  }
  func.func @transform_2(%arg0: i32) -> (i32, i32) {
    %c0_i32 = arith.constant 0 : i32
    %c0_i32_0 = arith.constant 0 : i32
    %c0_i32_1 = arith.constant 0 : i32
    return %c0_i32, %c0_i32_0 : i32, i32
  }
  func.func @transform_3(%arg0: i32) -> (i32, i32) {
    %c0_i32 = arith.constant 0 : i32
    %c0_i32_0 = arith.constant 0 : i32
    return %arg0, %c0_i32 : i32, i32
  }
}

</mosaic_0001>

<bundles_post_ra>
// kernel: tpu_custom_call.1
= control target key start
LH: loop header
LB: loop body
LE: loop exit
PB: predicated region body
PF: predicated region fallthrough
CT: control target
= control target key end

     0   :  { %8 = vsyncpa [#allocation3], 0  ;;  %s1211_s0 = inlined_call_operand.hbm [shape: bf16[128,128], index: 0, kind: input, shape index: {}]   ;;  %s1212_s1 = inlined_call_operand.hbm [shape: bf16[128,256], index: 1, kind: input, shape index: {}]   ;;  %s1213_s2 = inlined_call_operand.vmem [shape: f32[1,256], index: 2, kind: input, shape index: {}]   ;;  %s1214_s3 = inlined_call_operand.hbm [shape: bf16[128,256], index: 3, kind: output, shape index: {}]  }
   0x1   :  { %9 = vsyncpa [#allocation6], 0 }
   0x2   :  { %10 = vsyncpa [#allocation4], 0  ;;  %s968_s12 = smov [#allocation2]   ;;  %s896_s16 = scalar_lea.hbm %s1211_s0, 1024 }
   0x3   :  { %s16_s13 = sshll.u32 %s968_s12, 4  ;;  %p897_p0 = scmp.ne.s32.totalorder %s1211_s0, %s896_s16  ;;  %s17_s13 = int_to_ptr.vmem [resolvable:$true] %s16_s13 }
   0x4   :  { %p900_p1 = scmp.lt.u32.totalorder %s896_s16, %s1211_s0 }
   0x6   :  { %p902_p2 = pnand %p900_p1, %p897_p0 }
   0x8   :  { %905 = shalt.err (!%p902_p2)
}
   0x9   :  { %s906_s21 = scalar_lea.vmem %s17_s13, 1024  ;;  %p911_p4 = scmp.lt.s32.totalorder %s17_s13, %s17_s13 }
   0xa   :  { %p907_p3 = scmp.ne.s32.totalorder %s17_s13, %s906_s21  ;;  %p912_p5 = scmp.lt.s32.totalorder %s906_s21, %s906_s21 }
   0xc   :  { %p913_p6 = por %p912_p5, %p911_p4 }
   0xe   :  { %p914_p7 = pnand %p913_p6, %p907_p3 }
  0x10   :  { %917 = shalt.err (!%p914_p7)
}
  0x11   :  { %s969_s22 = smov 64   ;;  %s970_s23 = smov 4  }
  0x12   :  { %22 = dma.hbm_to_vmem [thread:$0]  %s1211_s0, 1024, %s17_s13, [#allocation3], %s969_s22, %s969_s22, %s970_s23  }
  0x13   :  { %s971_s26 = smov [#allocation5]   ;;  %s918_s30 = scalar_lea.hbm %s1212_s1, 2048 }
  0x14   :  { %s28_s27 = sshll.u32 %s971_s26, 4  ;;  %p919_p8 = scmp.ne.s32.totalorder %s1212_s1, %s918_s30  ;;  %s29_s27 = int_to_ptr.vmem [resolvable:$true] %s28_s27 }
  0x15   :  { %p922_p9 = scmp.lt.u32.totalorder %s918_s30, %s1212_s1 }
  0x17   :  { %p924_p10 = pnand %p922_p9, %p919_p8 }
  0x19   :  { %927 = shalt.err (!%p924_p10)
}
  0x1a   :  { %s928_s8 = scalar_lea.vmem %s29_s27, 2048  ;;  %p933_p12 = scmp.lt.s32.totalorder %s29_s27, %s29_s27 }
  0x1b   :  { %p929_p11 = scmp.ne.s32.totalorder %s29_s27, %s928_s8  ;;  %p934_p13 = scmp.lt.s32.totalorder %s928_s8, %s928_s8 }
  0x1d   :  { %p935_p0 = por %p934_p13, %p933_p12 }
  0x1f   :  { %p936_p1 = pnand %p935_p0, %p929_p11 }
  0x21   :  { %939 = shalt.err (!%p936_p1)
}
  0x22   :  { %s972_s0 = smov 128   ;;  %s973_s9 = smov 8  }
  0x23   :  { %34 = dma.hbm_to_vmem [thread:$0]  %s1212_s1, 2048, %s29_s27, [#allocation6], %s972_s0, %s972_s0, %s973_s9  }
  0x24   :  { %962 = dma.done.wait [#allocation3], 1024  }
  0x25   :  { %963 = vsyncadd [#allocation3], 4294966272 }
  0x26   :  { %964 = dma.done.wait [#allocation6], 2048  }
  0x27   :  { %965 = vsyncadd [#allocation6], 4294965248  ;;  %v974_v0 = vmov 0   ;;  %v832_v1 = vld [vmem:[#allocation5 + $0x4] ss:$8 sps:$4 sm:$0xff]   ;;  %v860_v21 = vld [vmem:[#allocation2 + $0x10] sm:$0xff]   ;;  %v78_v25 = vlaneseq }
  0x28   :  { %248 = vmatprep.mubr.bf16.mxu0 %v974_v0  ;;  %288 = vmatprep.mubr.bf16.mxu1 %v974_v0  ;;  %v834_v2 = vld [vmem:[#allocation5] ss:$8 sps:$4 sm:$0xff]   ;;  %v835_v3 = vld [vmem:[#allocation5 + $0x14] ss:$8 sps:$4 sm:$0xff]   ;;  %v837_v4 = vld [vmem:[#allocation5 + $0x10] ss:$8 sps:$4 sm:$0xff]  }
  0x29   :  { %216 = vmatprep.subr.bf16.mxu0 %v832_v1  ;;  %808 = vmatprep.subr.bf16.mxu1 %v832_v1  ;;  %v838_v5 = vld [vmem:[#allocation5 + $0x24] ss:$8 sps:$4 sm:$0xff]   ;;  %v840_v6 = vld [vmem:[#allocation5 + $0x20] ss:$8 sps:$4 sm:$0xff]   ;;  %v841_v7 = vld [vmem:[#allocation5 + $0x34] ss:$8 sps:$4 sm:$0xff]  }
  0x2a   :  { %217 = vmatpush1.bf16.msra.mxu0 %v834_v2  ;;  %816 = vmatpush1.bf16.msra.mxu1 %v834_v2  ;;  %v843_v8 = vld [vmem:[#allocation5 + $0x30] ss:$8 sps:$4 sm:$0xff]   ;;  %v844_v9 = vld [vmem:[#allocation5 + $0x44] ss:$8 sps:$4 sm:$0xff]   ;;  %v846_v10 = vld [vmem:[#allocation5 + $0x40] ss:$8 sps:$4 sm:$0xff]  }
  0x2b   :  { %218 = vmatprep.subr.bf16.mxu0 %v835_v3  ;;  %809 = vmatprep.subr.bf16.mxu1 %v835_v3  ;;  %v847_v11 = vld [vmem:[#allocation5 + $0x54] ss:$8 sps:$4 sm:$0xff]   ;;  %v849_v12 = vld [vmem:[#allocation5 + $0x50] ss:$8 sps:$4 sm:$0xff]   ;;  %v850_v13 = vld [vmem:[#allocation5 + $0x64] ss:$8 sps:$4 sm:$0xff]  }
  0x2c   :  { %v852_v14 = vld [vmem:[#allocation5 + $0x60] ss:$8 sps:$4 sm:$0xff]   ;;  %v853_v15 = vld [vmem:[#allocation5 + $0x74] ss:$8 sps:$4 sm:$0xff]   ;;  %v855_v16 = vld [vmem:[#allocation5 + $0x70] ss:$8 sps:$4 sm:$0xff]  }
  0x2d   :  { %v856_v17 = vld [vmem:[#allocation2] sm:$0xff]   ;;  %v858_v19 = vld [vmem:[#allocation2 + $0x8] sm:$0xff]   ;;  %v861_v22 = vld [vmem:[#allocation2 + $0x30] sm:$0xff]   ;;  %v79_v26 = vshrl.u32 %v78_v25, 7 }
  0x2e   :  { %219 = vmatpush1.bf16.msra.mxu0 %v837_v4  ;;  %817 = vmatpush1.bf16.msra.mxu1 %v837_v4  ;;  %v857_v18 = vld [vmem:[#allocation2 + $0x20] sm:$0xff]   ;;  %v859_v20 = vld [vmem:[#allocation2 + $0x28] sm:$0xff]   ;;  %v862_v23 = vld [vmem:[#allocation2 + $0x18] sm:$0xff]  }
  0x2f   :  { %220 = vmatprep.subr.bf16.mxu0 %v838_v5  ;;  %810 = vmatprep.subr.bf16.mxu1 %v838_v5  ;;  %v863_v24 = vld [vmem:[#allocation2 + $0x38] sm:$0xff]   ;;  %v80_v27 = vsub.s32 0, %v79_v26  ;;  %v76_v28 = vld [vmem:[%s1213_s2] sm:$0x3]  ;;  %v84_v40 = vsub.s32 1, %v79_v26  ;;  %s975_s2 = smov [#allocation7]  }
  0x30   :  { %s707_s13 = sshll.u32 %s975_s2, 4  ;;  %s708_s13 = int_to_ptr.vmem [resolvable:$true] %s707_s13 }
  0x31   :  { %v1034_v29 = vrot.slane %v76_v28, %v80_v27  ;;  %v1052_v49 = vrot.slane %v76_v28, %v84_v40  ;;  %s940_s14 = scalar_lea.vmem %s708_s13, 2048  ;;  %p945_p3 = scmp.lt.s32.totalorder %s708_s13, %s708_s13 }
  0x32   :  { %221 = vmatpush1.bf16.msra.mxu0 %v840_v6  ;;  %818 = vmatpush1.bf16.msra.mxu1 %v840_v6  ;;  %p941_p2 = scmp.ne.s32.totalorder %s708_s13, %s940_s14  ;;  %p946_p4 = scmp.lt.s32.totalorder %s940_s14, %s940_s14 }
  0x33   :  { %222 = vmatprep.subr.bf16.mxu0 %v841_v7  ;;  %811 = vmatprep.subr.bf16.mxu1 %v841_v7 }
  0x34   :  { %p947_p5 = por %p946_p4, %p945_p3 }
  0x36   :  { %223 = vmatpush1.bf16.msra.mxu0 %v843_v8  ;;  %819 = vmatpush1.bf16.msra.mxu1 %v843_v8  ;;  %p948_p6 = pnand %p947_p5, %p941_p2 }
  0x37   :  { %224 = vmatprep.subr.bf16.mxu0 %v844_v9  ;;  %812 = vmatprep.subr.bf16.mxu1 %v844_v9 }
  0x3a   :  { %225 = vmatpush1.bf16.msra.mxu0 %v846_v10  ;;  %820 = vmatpush1.bf16.msra.mxu1 %v846_v10 }
  0x3b   :  { %226 = vmatprep.subr.bf16.mxu0 %v847_v11  ;;  %813 = vmatprep.subr.bf16.mxu1 %v847_v11 }
  0x3e   :  { %227 = vmatpush1.bf16.msra.mxu0 %v849_v12  ;;  %821 = vmatpush1.bf16.msra.mxu1 %v849_v12 }
  0x3f   :  { %228 = vmatprep.subr.bf16.mxu0 %v850_v13  ;;  %814 = vmatprep.subr.bf16.mxu1 %v850_v13 }
  0x42   :  { %229 = vmatpush1.bf16.msra.mxu0 %v852_v14  ;;  %822 = vmatpush1.bf16.msra.mxu1 %v852_v14 }
  0x43   :  { %230 = vmatprep.subr.bf16.mxu0 %v853_v15  ;;  %815 = vmatprep.subr.bf16.mxu1 %v853_v15 }
  0x46   :  { %231 = vmatpush1.bf16.msra.mxu0 %v855_v16  ;;  %823 = vmatpush1.bf16.msra.mxu1 %v855_v16 }
  0x49   :  { %249 = vmatmul.mubr.bf16.vlgmr.msra.gmra.mrb[0].mxu0 %v856_v17  ;;  %289 = vmatmul.mubr.bf16.vlgmr.msra.gmra.mrb[0].mxu1 %v857_v18 }
  0x4a   :  { %258 = vmatprep.mubr.bf16.mxu0 %v974_v0  ;;  %298 = vmatprep.mubr.bf16.mxu1 %v974_v0 }
  0x51   :  { %259 = vmatmul.mubr.bf16.gmra.mrb[4].mxu0 %v858_v19  ;;  %299 = vmatmul.mubr.bf16.gmra.mrb[4].mxu1 %v859_v20 }
  0x52   :  { %268 = vmatprep.mubr.bf16.mxu0 %v974_v0  ;;  %308 = vmatprep.mubr.bf16.mxu1 %v974_v0 }
  0x59   :  { %269 = vmatmul.mubr.bf16.gmra.mrb[8].mxu0 %v860_v21  ;;  %309 = vmatmul.mubr.bf16.gmra.mrb[8].mxu1 %v861_v22 }
  0x5a   :  { %278 = vmatprep.mubr.bf16.mxu0 %v974_v0  ;;  %318 = vmatprep.mubr.bf16.mxu1 %v974_v0 }
  0x61   :  { %279 = vmatmul.mubr.bf16.gmra.mrb[12].mxu0 %v862_v23  ;;  %319 = vmatmul.mubr.bf16.gmra.mrb[12].mxu1 %v863_v24 }
 0x11c   :  { %v250_v30 = vpop.f32.mrb[0].mxu0  ;;  %v290_v31 = vpop.f32.mrb[0].mxu1 }
 0x11d   :  { %v1037_v32 = vadd.f32 %v250_v30, %v1034_v29  ;;  %v1040_v33 = vadd.f32 %v290_v31, %v1034_v29  ;;  %v252_v34 = vpop.f32.mrb[1].mxu0  ;;  %v292_v35 = vpop.f32.mrb[1].mxu1 }
 0x11e   :  { %v254_v36 = vpop.f32.mrb[2].mxu0  ;;  %v294_v37 = vpop.f32.mrb[2].mxu1  ;;  %v253_v60 = vadd.f32 %v252_v34, %v1052_v49  ;;  %v293_v0 = vadd.f32 %v292_v35, %v1052_v49 }
 0x11f   :  { %v366_v38 = vmin.f32 %v1037_v32, 0.0  ;;  %v382_v39 = vmin.f32 %v1040_v33, 0.0  ;;  %v256_v41 = vpop.f32.mrb[3].mxu0  ;;  %v296_v42 = vpop.f32.mrb[3].mxu1  ;;  %v1045_v43 = vadd.f32 %v254_v36, %v1034_v29  ;;  %v1048_v44 = vadd.f32 %v294_v37, %v1034_v29 }
 0x120   :  { %vm334_vm0 = vcmp.gt.f32.partialorder %v1037_v32, 0.0  ;;  %v257_v5 = vadd.f32 %v256_v41, %v1052_v49  ;;  %v297_v6 = vadd.f32 %v296_v42, %v1052_v49  ;;  %vm350_vm1 = vcmp.gt.f32.partialorder %v1040_v33, 0.0 }
 0x121   :  { %v398_v45 = vmul.f32 1.442695, %v366_v38  ;;  %v430_v46 = vmul.f32 1.442695, %v382_v39  ;;  %v368_v47 = vmin.f32 %v1045_v43, 0.0  ;;  %v384_v48 = vmin.f32 %v1048_v44, 0.0 }
 0x122   :  { %v527_v9 = vmax.f32 %v253_v60, 0.0  ;;  %v543_v11 = vmax.f32 %v293_v0, 0.0  ;;  %vm336_vm2 = vcmp.gt.f32.partialorder %v1045_v43, 0.0  ;;  %vm352_vm3 = vcmp.gt.f32.partialorder %v1048_v44, 0.0 }
 0x123   :  { %864 = vpow2.f32 %v398_v45  ;;  %v402_v50 = vmul.f32 1.442695, %v368_v47  ;;  %v434_v51 = vmul.f32 1.442695, %v384_v48  ;;  %v529_v23 = vmax.f32 %v257_v5, 0.0 }
 0x124   :  { %866 = vpow2.f32 %v430_v46  ;;  %v260_v52 = vpop.f32.mrb[4].mxu0  ;;  %v300_v53 = vpop.f32.mrb[4].mxu1  ;;  %v545_v24 = vmax.f32 %v297_v6, 0.0 }
 0x125   :  { %v1055_v54 = vadd.f32 %v260_v52, %v1034_v29  ;;  %v1058_v55 = vadd.f32 %v300_v53, %v1034_v29  ;;  %v262_v56 = vpop.f32.mrb[5].mxu0  ;;  %v302_v57 = vpop.f32.mrb[5].mxu1  ;;  %868 = vpow2.f32 %v402_v50 }
 0x126   :  { %v264_v58 = vpop.f32.mrb[6].mxu0  ;;  %v304_v59 = vpop.f32.mrb[6].mxu1  ;;  %870 = vpow2.f32 %v434_v51  ;;  %v263_v28 = vadd.f32 %v262_v56, %v1052_v49  ;;  %v303_v37 = vadd.f32 %v302_v57, %v1052_v49 }
 0x127   :  { %v370_v61 = vmin.f32 %v1055_v54, 0.0  ;;  %v1062_v62 = vpop.f32.mrb[7].mxu0  ;;  %v1064_v63 = vpop.f32.mrb[7].mxu1  ;;  %v386_v1 = vmin.f32 %v1058_v55, 0.0  ;;  %v1069_v2 = vadd.f32 %v264_v58, %v1034_v29  ;;  %v1073_v4 = vadd.f32 %v304_v59, %v1034_v29 }
 0x128   :  { %vm338_vm4 = vcmp.gt.f32.partialorder %v1055_v54, 0.0  ;;  %vm354_vm5 = vcmp.gt.f32.partialorder %v1058_v55, 0.0  ;;  %v267_v53 = vadd.f32 %v1062_v62, %v1052_v49  ;;  %v531_v59 = vmax.f32 %v263_v28, 0.0 }
 0x129   :  { %v406_v3 = vmul.f32 1.442695, %v370_v61  ;;  %v438_v7 = vmul.f32 1.442695, %v386_v1  ;;  %v372_v8 = vmin.f32 %v1069_v2, 0.0  ;;  %v388_v10 = vmin.f32 %v1073_v4, 0.0 }
 0x12a   :  { %v547_v60 = vmax.f32 %v303_v37, 0.0  ;;  %vm340_vm6 = vcmp.gt.f32.partialorder %v1069_v2, 0.0  ;;  %vm356_vm7 = vcmp.gt.f32.partialorder %v1073_v4, 0.0 }
 0x12b   :  { %872 = vpow2.f32 %v406_v3  ;;  %v410_v12 = vmul.f32 1.442695, %v372_v8  ;;  %v442_v16 = vmul.f32 1.442695, %v388_v10 }
 0x12c   :  { %874 = vpow2.f32 %v438_v7  ;;  %v270_v13 = vpop.f32.mrb[8].mxu0  ;;  %v310_v14 = vpop.f32.mrb[8].mxu1 }
 0x12d   :  { %v865_v15 = vpop.eup %864  ;;  %v1083_v17 = vadd.f32 %v270_v13, %v1034_v29  ;;  %v1086_v18 = vadd.f32 %v310_v14, %v1034_v29  ;;  %v1088_v19 = vpop.f32.mrb[9].mxu0  ;;  %876 = vpow2.f32 %v410_v12 }
 0x12e   :  { %v1090_v20 = vpop.f32.mrb[9].mxu1  ;;  %v867_v21 = vpop.eup %866  ;;  %v744_v22 = vadd.f32 -1.0, %v865_v15  ;;  %878 = vpow2.f32 %v442_v16  ;;  %v533_v15 = vmax.f32 %v267_v53, 0.0  ;;  %v273_v28 = vadd.f32 %v1088_v19, %v1052_v49 }
 0x12f   :  { %v274_v25 = vpop.f32.mrb[10].mxu0  ;;  %v314_v26 = vpop.f32.mrb[10].mxu1  ;;  %v760_v27 = vadd.f32 -1.0, %v867_v21  ;;  %v374_v30 = vmin.f32 %v1083_v17, 0.0  ;;  %v390_v38 = vmin.f32 %v1086_v18, 0.0  ;;  %v313_v37 = vadd.f32 %v1090_v20, %v1052_v49 }
 0x130   :  { %v1094_v31 = vpop.f32.mrb[11].mxu0  ;;  %v1096_v34 = vpop.f32.mrb[11].mxu1  ;;  %v494_v36 = vsel %vm334_vm0, %v1037_v32, %v744_v22  ;;  %v1112_v50 = vadd.f32 %v274_v25, %v1034_v29  ;;  %v1115_v51 = vadd.f32 %v314_v26, %v1034_v29  ;;  %vm342_vm8 = vcmp.gt.f32.partialorder %v1083_v17, 0.0 }
 0x131   :  { %v869_v35 = vpop.eup %868  ;;  %v792_v40 = vpack.c.bf16 %v527_v9, %v494_v36  ;;  %v510_v41 = vsel %vm350_vm1, %v1040_v33, %v760_v27  ;;  %v414_v45 = vmul.f32 1.442695, %v374_v30  ;;  %v446_v48 = vmul.f32 1.442695, %v390_v38 }
 0x132   :  { %v871_v39 = vpop.eup %870  ;;  %v746_v42 = vadd.f32 -1.0, %v869_v35  ;;  %v800_v46 = vpack.c.bf16 %v543_v11, %v510_v41  ;;  %v376_v61 = vmin.f32 %v1112_v50, 0.0  ;;  %v392_v62 = vmin.f32 %v1115_v51, 0.0 }
 0x133   :  { %v762_v47 = vadd.f32 -1.0, %v871_v39  ;;  %686 = vst [vmem:[#allocation7] sm:$0xff] %v792_v40  ;;  %880 = vpow2.f32 %v414_v45  ;;  %vm358_vm9 = vcmp.gt.f32.partialorder %v1086_v18, 0.0  ;;  %v277_v53 = vadd.f32 %v1094_v31, %v1052_v49 }
 0x134   :  { %v496_v32 = vsel %vm336_vm2, %v1045_v43, %v746_v42  ;;  %694 = vst [vmem:[#allocation7 + $0x40] sm:$0xff] %v800_v46  ;;  %882 = vpow2.f32 %v446_v48  ;;  %v280_v56 = vpop.f32.mrb[12].mxu0  ;;  %v320_v57 = vpop.f32.mrb[12].mxu1  ;;  %v418_v9 = vmul.f32 1.442695, %v376_v61  ;;  %v551_v48 = vmax.f32 %v313_v37, 0.0 }
 0x135   :  { %v793_v33 = vpack.c.bf16 %v529_v23, %v496_v32  ;;  %v512_v52 = vsel %vm352_vm3, %v1048_v44, %v762_v47  ;;  %v873_v43 = vpop.eup %872  ;;  %v1123_v0 = vpop.f32.mrb[13].mxu0  ;;  %v307_v44 = vadd.f32 %v1064_v63, %v1052_v49  ;;  %v1132_v10 = vadd.f32 %v280_v56, %v1034_v29 }
 0x136   :  { %v801_v58 = vpack.c.bf16 %v545_v24, %v512_v52  ;;  %v1125_v1 = vpop.f32.mrb[13].mxu1  ;;  %v875_v3 = vpop.eup %874  ;;  %v748_v5 = vadd.f32 -1.0, %v873_v43  ;;  %v1135_v11 = vadd.f32 %v320_v57, %v1034_v29  ;;  %v450_v16 = vmul.f32 1.442695, %v392_v62 }
 0x137   :  { %687 = vst [vmem:[#allocation7 + $0x8] sm:$0xff] %v793_v33  ;;  %v284_v6 = vpop.f32.mrb[14].mxu0  ;;  %v324_v7 = vpop.f32.mrb[14].mxu1  ;;  %v764_v8 = vadd.f32 -1.0, %v875_v3  ;;  %884 = vpow2.f32 %v418_v9  ;;  %v549_v27 = vmax.f32 %v307_v44, 0.0  ;;  %v378_v30 = vmin.f32 %v1132_v10, 0.0 }
 0x138   :  { %695 = vst [vmem:[#allocation7 + $0x48] sm:$0xff] %v801_v58  ;;  %v1137_v12 = vpop.f32.mrb[15].mxu0  ;;  %v1139_v13 = vpop.f32.mrb[15].mxu1  ;;  %v498_v63 = vsel %vm338_vm4, %v1055_v54, %v748_v5  ;;  %886 = vpow2.f32 %v450_v16  ;;  %v394_v35 = vmin.f32 %v1135_v11, 0.0  ;;  %v1161_v41 = vadd.f32 %v284_v6, %v1034_v29 }
 0x139   :  { %v877_v14 = vpop.eup %876  ;;  %v794_v22 = vpack.c.bf16 %v531_v59, %v498_v63  ;;  %v514_v23 = vsel %vm354_vm5, %v1058_v55, %v764_v8  ;;  %v422_v40 = vmul.f32 1.442695, %v378_v30  ;;  %v1166_v45 = vadd.f32 %v324_v7, %v1034_v29 }
 0x13a   :  { %v879_v21 = vpop.eup %878  ;;  %v750_v24 = vadd.f32 -1.0, %v877_v14  ;;  %v802_v25 = vpack.c.bf16 %v547_v60, %v514_v23  ;;  %v380_v46 = vmin.f32 %v1161_v41, 0.0  ;;  %v317_v57 = vadd.f32 %v1096_v34, %v1052_v49 }
 0x13b   :  { %v766_v26 = vadd.f32 -1.0, %v879_v21  ;;  %688 = vst [vmem:[#allocation7 + $0x10] sm:$0xff] %v794_v22  ;;  %888 = vpow2.f32 %v422_v40  ;;  %v396_v32 = vmin.f32 %v1166_v45, 0.0  ;;  %vm344_vm10 = vcmp.gt.f32.partialorder %v1112_v50, 0.0 }
 0x13c   :  { %v500_v54 = vsel %vm340_vm6, %v1069_v2, %v750_v24  ;;  %696 = vst [vmem:[#allocation7 + $0x50] sm:$0xff] %v802_v25  ;;  %v454_v2 = vmul.f32 1.442695, %v394_v35  ;;  %v426_v29 = vmul.f32 1.442695, %v380_v46  ;;  %v537_v60 = vmax.f32 %v277_v53, 0.0 }
 0x13d   :  { %v795_v55 = vpack.c.bf16 %v533_v15, %v500_v54  ;;  %v516_v36 = vsel %vm356_vm7, %v1073_v4, %v766_v26  ;;  %v881_v38 = vpop.eup %880  ;;  %v535_v4 = vmax.f32 %v273_v28, 0.0  ;;  %v458_v43 = vmul.f32 1.442695, %v396_v32 }
 0x13e   :  { %v803_v39 = vpack.c.bf16 %v549_v27, %v516_v36  ;;  %v883_v19 = vpop.eup %882  ;;  %v752_v42 = vadd.f32 -1.0, %v881_v38  ;;  %890 = vpow2.f32 %v454_v2  ;;  %vm360_vm11 = vcmp.gt.f32.partialorder %v1115_v51, 0.0 }
 0x13f   :  { %689 = vst [vmem:[#allocation7 + $0x18] sm:$0xff] %v795_v55  ;;  %v768_v20 = vadd.f32 -1.0, %v883_v19  ;;  %892 = vpow2.f32 %v426_v29  ;;  %v553_v61 = vmax.f32 %v317_v57, 0.0  ;;  %v283_v5 = vadd.f32 %v1123_v0, %v1052_v49 }
 0x140   :  { %697 = vst [vmem:[#allocation7 + $0x58] sm:$0xff] %v803_v39  ;;  %v502_v47 = vsel %vm342_vm8, %v1083_v17, %v752_v42  ;;  %894 = vpow2.f32 %v458_v43  ;;  %v323_v62 = vadd.f32 %v1125_v1, %v1052_v49  ;;  %vm346_vm12 = vcmp.gt.f32.partialorder %v1132_v10, 0.0 }
 0x141   :  { %v796_v33 = vpack.c.bf16 %v535_v4, %v502_v47  ;;  %v518_v52 = vsel %vm358_vm9, %v1086_v18, %v768_v20  ;;  %v885_v58 = vpop.eup %884  ;;  %v539_v9 = vmax.f32 %v283_v5, 0.0  ;;  %v287_v14 = vadd.f32 %v1137_v12, %v1052_v49 }
 0x142   :  { %v804_v56 = vpack.c.bf16 %v551_v48, %v518_v52  ;;  %v887_v17 = vpop.eup %886  ;;  %v754_v59 = vadd.f32 -1.0, %v885_v58  ;;  %vm362_vm13 = vcmp.gt.f32.partialorder %v1135_v11, 0.0  ;;  %v555_v0 = vmax.f32 %v323_v62, 0.0 }
 0x143   :  { %690 = vst [vmem:[#allocation7 + $0x20] sm:$0xff] %v796_v33  ;;  %v770_v18 = vadd.f32 -1.0, %v887_v17  ;;  %v327_v1 = vadd.f32 %v1139_v13, %v1052_v49  ;;  %vm348_vm14 = vcmp.gt.f32.partialorder %v1161_v41, 0.0  ;;  %v541_v24 = vmax.f32 %v287_v14, 0.0 }
 0x144   :  { %698 = vst [vmem:[#allocation7 + $0x60] sm:$0xff] %v804_v56  ;;  %v504_v31 = vsel %vm344_vm10, %v1112_v50, %v754_v59  ;;  %vm364_vm15 = vcmp.gt.f32.partialorder %v1166_v45, 0.0 }
 0x145   :  { %v797_v3 = vpack.c.bf16 %v537_v60, %v504_v31  ;;  %v520_v34 = vsel %vm360_vm11, %v1115_v51, %v770_v18  ;;  %v889_v6 = vpop.eup %888  ;;  %v557_v49 = vmax.f32 %v327_v1, 0.0 }
 0x146   :  { %v805_v44 = vpack.c.bf16 %v553_v61, %v520_v34  ;;  %v756_v8 = vadd.f32 -1.0, %v889_v6 }
 0x147   :  { %691 = vst [vmem:[#allocation7 + $0x28] sm:$0xff] %v797_v3 }
 0x148   :  { %v891_v7 = vpop.eup %890  ;;  %699 = vst [vmem:[#allocation7 + $0x68] sm:$0xff] %v805_v44  ;;  %v506_v51 = vsel %vm346_vm12, %v1132_v10, %v756_v8 }
 0x149   :  { %v772_v50 = vadd.f32 -1.0, %v891_v7  ;;  %v893_v63 = vpop.eup %892  ;;  %v798_v15 = vpack.c.bf16 %v539_v9, %v506_v51 }
 0x14a   :  { %v895_v21 = vpop.eup %894  ;;  %v758_v23 = vadd.f32 -1.0, %v893_v63 }
 0x14b   :  { %v522_v16 = vsel %vm362_vm13, %v1135_v11, %v772_v50  ;;  %692 = vst [vmem:[#allocation7 + $0x30] sm:$0xff] %v798_v15  ;;  %v774_v12 = vadd.f32 -1.0, %v895_v21 }
 0x14c   :  { %v806_v22 = vpack.c.bf16 %v555_v0, %v522_v16  ;;  %v508_v10 = vsel %vm348_vm14, %v1161_v41, %v758_v23 }
 0x14d   :  { %v799_v13 = vpack.c.bf16 %v541_v24, %v508_v10  ;;  %v524_v25 = vsel %vm364_vm15, %v1166_v45, %v774_v12 }
 0x14e   :  { %700 = vst [vmem:[#allocation7 + $0x70] sm:$0xff] %v806_v22  ;;  %v807_v11 = vpack.c.bf16 %v557_v49, %v524_v25 }
 0x14f   :  { %693 = vst [vmem:[#allocation7 + $0x38] sm:$0xff] %v799_v13 }
 0x150   :  { %701 = vst [vmem:[#allocation7 + $0x78] sm:$0xff] %v807_v11 }
 0x151   :  { %951 = shalt.err (!%p948_p6)
}
 0x152   :  { %s952_s17 = scalar_lea.hbm %s1214_s3, 2048 }
 0x153   :  { %p953_p7 = scmp.ne.s32.totalorder %s1214_s3, %s952_s17  ;;  %p956_p8 = scmp.lt.u32.totalorder %s952_s17, %s1214_s3 }
 0x155   :  { %p958_p9 = pnand %p956_p8, %p953_p7 }
 0x157   :  { %961 = shalt.err (!%p958_p9)
}
 0x158   :  { %713 = dma.vmem_to_hbm [thread:$0]  %s708_s13, 2048, %s1214_s3, [#allocation4], %s972_s0, %s972_s0, %s973_s9  }
 0x159   :  { %966 = dma.done.wait [#allocation4], 2048  }
 0x15a   :  { %967 = vsyncadd [#allocation4], 4294965248 }
 0x15b   :  { %717 = vsyncpa [#allocation3], 1 }
 0x15c   :  { %718 = vsyncpa [#allocation6], 1 }
 0x15d   :  { %719 = vsyncpa [#allocation4], 1 }

</bundles_post_ra>
